<compile_context>
chip_gen: v6e
topology: v6e:2x2x1
jax: 0.10.0
libtpu: 0.0.40
codegen_flags: <defaults>
</compile_context>

<pallas_src>
import jax
import jax.numpy as jnp
from jax.experimental import pallas as pl
from jax.experimental.pallas import tpu as pltpu

_LANE = 128      # lane width (last dim)
_SUBLANE = 8     # sublane width (second-to-last dim)


def _round_up(n, m):
    return ((n + m - 1) // m) * m


def qnet_kernel(x_ref, w1_ref, b1_ref, w2_ref, b2_ref, o_ref):
    # fc1: (bm, S) bf16 @ (S, Hp) bf16 -> f32 accumulation on the MXU.
    h = jnp.dot(x_ref[...], w1_ref[...], preferred_element_type=jnp.float32)
    # bias + ReLU in f32 on the VPU (Hp is a lane multiple -> dense vregs).
    h = jnp.maximum(h + b1_ref[...], 0.0)
    # fc2: cast activation to bf16 for the second MXU matmul, accumulate f32.
    y = jnp.dot(h.astype(w2_ref.dtype), w2_ref[...],
                preferred_element_type=jnp.float32)
    o_ref[...] = (y + b2_ref[...]).astype(o_ref.dtype)


def prepare_pallas_params(w1, b1, w2, b2):
    """One-time (hoisted out of the forward) packing of the parameters:
      * hidden dim zero-padded to a lane multiple (exact: padded hidden cols
        get bias 0 -> relu 0 -> zero rows of w2 -> no contribution),
      * MXU operands cast to bf16, biases kept f32 for the f32 epilogue.
    """
    state_dim, hidden_dim = w1.shape
    action_dim = w2.shape[1]
    Hp = _round_up(hidden_dim, _LANE)
    bf16, f32 = jnp.bfloat16, jnp.float32
    w1_p = jnp.zeros((state_dim, Hp), bf16).at[:, :hidden_dim].set(w1.astype(bf16))
    b1_p = jnp.zeros((1, Hp), f32).at[:, :hidden_dim].set(
        b1.reshape(1, -1).astype(f32))
    w2_p = jnp.zeros((Hp, action_dim), bf16).at[:hidden_dim, :].set(w2.astype(bf16))
    b2_p = b2.reshape(1, -1).astype(f32)
    return {"w1": w1_p, "b1": b1_p, "w2": w2_p, "b2": b2_p,
            "dims": (state_dim, hidden_dim, action_dim)}


def _qnet_forward_pallas(x, pparams, *, block_b=2048):
    B, state_dim = x.shape
    action_dim = pparams["dims"][2]
    w1_p, b1_p, w2_p, b2_p = (pparams["w1"], pparams["b1"],
                              pparams["w2"], pparams["b2"])
    Hp = w1_p.shape[1]

    # Batch tile: always a multiple of 8 (the (8,128) block rule).
    block_b = max(_SUBLANE, _round_up(block_b, _SUBLANE))
    Bp_min = _round_up(B, _SUBLANE)
    if Bp_min <= block_b and Bp_min >= 2 * _SUBLANE:
        # Whole batch fits one tile: split into 2 grid steps so the "parallel"
        # batch axis can use both TensorCores on v7x (cheap on v5e/v6e).
        bm = _round_up(pl.cdiv(Bp_min, 2), _SUBLANE)
    else:
        bm = min(block_b, Bp_min)
    Bp = _round_up(Bp_min, bm)

    # Stream x in bf16 (halves the dominant HBM stream); state dim stays
    # unpadded (block last dim equal to the full array dim is legal).
    x_in = x.astype(jnp.bfloat16)
    if Bp != B:
        x_in = jnp.pad(x_in, ((0, Bp - B), (0, 0)))

    grid = (Bp // bm,)
    out = pl.pallas_call(
        qnet_kernel,
        out_shape=jax.ShapeDtypeStruct((Bp, action_dim), jnp.float32),
        grid_spec=pltpu.PrefetchScalarGridSpec(
            num_scalar_prefetch=0,
            grid=grid,
            in_specs=[
                # x: one batch tile per grid step, feature dim unpadded.
                pl.BlockSpec((bm, state_dim), lambda i: (i, 0)),
                # Weights/biases: constant block index -> VMEM-resident.
                pl.BlockSpec((state_dim, Hp), lambda i: (0, 0)),
                pl.BlockSpec((1, Hp), lambda i: (0, 0)),
                pl.BlockSpec((Hp, action_dim), lambda i: (0, 0)),
                pl.BlockSpec((1, action_dim), lambda i: (0, 0)),
            ],
            # Unpadded (bm, action_dim) output tiles: far fewer bytes than a
            # lane-padded store + post-call slice for this tiny output.
            out_specs=pl.BlockSpec((bm, action_dim), lambda i: (i, 0)),
        ),
        compiler_params=pltpu.CompilerParams(
            dimension_semantics=("parallel",),
        ),
    )(x_in, w1_p, b1_p, w2_p, b2_p)

    return out[:B] if Bp != B else out


def qnet_forward(x, w1, b1, w2, b2, *, pallas_params=None, block_b=2048,
                 min_pallas_batch=512, force_pallas=False):
    """y = relu(x @ w1 + b1) @ w2 + b2, shape (B, action_dim) float32."""
    B = x.shape[0]
    if not force_pallas and B < min_pallas_batch:
        # Tiny batches: one fused XLA executable beats a pallas_call plus
        # surrounding pad/cast/slice dispatches.
        return jnp.maximum(x @ w1 + b1.reshape(1, -1), 0.0) @ w2 + b2.reshape(1, -1)
    if pallas_params is None:
        pallas_params = prepare_pallas_params(w1, b1, w2, b2)
    return _qnet_forward_pallas(x, pallas_params, block_b=block_b)


def init_qnet_params(key, state_dim, action_dim, hidden_dim=64):
    """Matches QNet.__init__/_init_weights: weights ~ Normal(0, 0.01); biases
    keep the PyTorch Linear default Uniform(-1/sqrt(fan_in), 1/sqrt(fan_in))."""
    k1, k2, k3, k4 = jax.random.split(key, 4)
    w1 = 0.01 * jax.random.normal(k1, (state_dim, hidden_dim), jnp.float32)
    w2 = 0.01 * jax.random.normal(k2, (hidden_dim, action_dim), jnp.float32)
    bound1 = 1.0 / jnp.sqrt(jnp.float32(state_dim))
    bound2 = 1.0 / jnp.sqrt(jnp.float32(hidden_dim))
    b1 = jax.random.uniform(k3, (1, hidden_dim), jnp.float32, -bound1, bound1)
    b2 = jax.random.uniform(k4, (1, action_dim), jnp.float32, -bound2, bound2)
    return w1, b1, w2, b2


if __name__ == "__main__":
    # Small shapes consistent with a typical DQN state/action space.
    batch, state_dim, action_dim, hidden_dim = 8, 16, 4, 64

    key = jax.random.PRNGKey(0)
    kx, kp = jax.random.split(key)
    x = jax.random.normal(kx, (batch, state_dim), jnp.float32)
    w1, b1, w2, b2 = init_qnet_params(kp, state_dim, action_dim, hidden_dim)
    pparams = prepare_pallas_params(w1, b1, w2, b2)   # hoisted, done once

    ref = jnp.maximum(x @ w1 + b1, 0.0) @ w2 + b2

    # 1) Force the Pallas path on the small batch to exercise the kernel.
    out = qnet_forward(x, w1, b1, w2, b2, pallas_params=pparams,
                       force_pallas=True)
    jax.block_until_ready(out)
    assert out.shape == (batch, action_dim)
    assert jnp.allclose(out, ref, atol=1e-2, rtol=1e-2)   # bf16 MXU inputs

    # 2) Default small-batch fast path (pure XLA) matches exactly.
    out_fast = qnet_forward(x, w1, b1, w2, b2, pallas_params=pparams)
    assert jnp.allclose(out_fast, ref, atol=1e-5, rtol=1e-5)

    # 3) Large batch: multiple grid steps through the Pallas kernel.
    xb = jax.random.normal(kx, (3000, state_dim), jnp.float32)
    outb = qnet_forward(xb, w1, b1, w2, b2, pallas_params=pparams,
                        block_b=1024)
    jax.block_until_ready(outb)
    refb = jnp.maximum(xb @ w1 + b1, 0.0) @ w2 + b2
    assert outb.shape == (3000, action_dim)
    assert jnp.allclose(outb, refb, atol=1e-2, rtol=1e-2)

    print("KERNEL_OK")
</pallas_src>

<mosaic_0001>
module attributes {stable_mosaic.version = 11 : i64} {
  func.func @qnet_kernel(%arg0: i32, %arg1: memref<8x16xbf16, #tpu.memory_space<vmem>>, %arg2: memref<16x128xbf16, #tpu.memory_space<vmem>>, %arg3: memref<1x128xf32, #tpu.memory_space<vmem>>, %arg4: memref<128x4xbf16, #tpu.memory_space<vmem>>, %arg5: memref<1x4xf32, #tpu.memory_space<vmem>>, %arg6: memref<8x4xf32, #tpu.memory_space<vmem>>) attributes {dimension_semantics = [#tpu.dimension_semantics<parallel>], iteration_bounds = array<i64: 1>, scalar_prefetch = 0 : i64, scratch_operands = 0 : i64, tpu.core_type = #tpu.core_type<tc>, window_params = [{transform_indices = @transform_0, window_bounds = array<i64: 8, 16>}, {pipeline_mode = #tpu.pipeline_mode<synchronous>, transform_indices = @transform_1, window_bounds = array<i64: 16, 128>}, {pipeline_mode = #tpu.pipeline_mode<synchronous>, transform_indices = @transform_2, window_bounds = array<i64: 1, 128>}, {pipeline_mode = #tpu.pipeline_mode<synchronous>, transform_indices = @transform_3, window_bounds = array<i64: 128, 4>}, {pipeline_mode = #tpu.pipeline_mode<synchronous>, transform_indices = @transform_4, window_bounds = array<i64: 1, 4>}, {transform_indices = @transform_5, window_bounds = array<i64: 8, 4>}]} {
    %c0 = arith.constant 0 : index
    %c0_0 = arith.constant 0 : index
    %0 = vector.load %arg1[%c0, %c0_0] : memref<8x16xbf16, #tpu.memory_space<vmem>>, vector<8x16xbf16>
    %c0_1 = arith.constant 0 : index
    %c0_2 = arith.constant 0 : index
    %1 = vector.load %arg2[%c0_1, %c0_2] : memref<16x128xbf16, #tpu.memory_space<vmem>>, vector<16x128xbf16>
    %cst = arith.constant dense<0.000000e+00> : vector<8x128xf32>
    %2 = tpu.matmul %0, %1, %cst {dimension_numbers = #tpu.dot_dimension_numbers<[1], [0], [0], [1], [0, 0, 1, 1], [], []>} : vector<8x16xbf16>, vector<16x128xbf16>, vector<8x128xf32> -> vector<8x128xf32>
    %c0_3 = arith.constant 0 : index
    %c0_4 = arith.constant 0 : index
    %3 = vector.load %arg3[%c0_3, %c0_4] : memref<1x128xf32, #tpu.memory_space<vmem>>, vector<1x128xf32>
    %4 = vector.broadcast %3 : vector<1x128xf32> to vector<8x128xf32>
    %5 = arith.addf %2, %4 : vector<8x128xf32>
    %cst_5 = arith.constant 0.000000e+00 : f32
    %6 = vector.broadcast %cst_5 : f32 to vector<8x128xf32>
    %7 = arith.maximumf %5, %6 : vector<8x128xf32>
    %8 = arith.truncf %7 : vector<8x128xf32> to vector<8x128xbf16>
    %c0_6 = arith.constant 0 : index
    %c0_7 = arith.constant 0 : index
    %9 = vector.load %arg4[%c0_6, %c0_7] : memref<128x4xbf16, #tpu.memory_space<vmem>>, vector<128x4xbf16>
    %cst_8 = arith.constant dense<0.000000e+00> : vector<8x4xf32>
    %10 = tpu.matmul %8, %9, %cst_8 {dimension_numbers = #tpu.dot_dimension_numbers<[1], [0], [0], [1], [0, 0, 1, 1], [], []>} : vector<8x128xbf16>, vector<128x4xbf16>, vector<8x4xf32> -> vector<8x4xf32>
    %c0_9 = arith.constant 0 : index
    %c0_10 = arith.constant 0 : index
    %11 = vector.load %arg5[%c0_9, %c0_10] : memref<1x4xf32, #tpu.memory_space<vmem>>, vector<1x4xf32>
    %12 = vector.broadcast %11 : vector<1x4xf32> to vector<8x4xf32>
    %13 = arith.addf %10, %12 : vector<8x4xf32>
    %c0_11 = arith.constant 0 : index
    %c0_12 = arith.constant 0 : index
    %14 = vector.load %arg6[%c0_11, %c0_12] : memref<8x4xf32, #tpu.memory_space<vmem>>, vector<8x4xf32>
    tpu.vector_store %arg6[%c0_11, %c0_12], %13 {strides = array<i32>} : memref<8x4xf32, #tpu.memory_space<vmem>>, vector<8x4xf32>,
    return
  }
  func.func @transform_0(%arg0: i32) -> (i32, i32) {
    %c0_i32 = arith.constant 0 : i32
    %c0_i32_0 = arith.constant 0 : i32
    return %arg0, %c0_i32 : i32, i32
  }
  func.func @transform_1(%arg0: i32) -> (i32, i32) {
    %c0_i32 = arith.constant 0 : i32
    %c0_i32_0 = arith.constant 0 : i32
    %c0_i32_1 = arith.constant 0 : i32
    return %c0_i32, %c0_i32_0 : i32, i32
  }
  func.func @transform_2(%arg0: i32) -> (i32, i32) {
    %c0_i32 = arith.constant 0 : i32
    %c0_i32_0 = arith.constant 0 : i32
    %c0_i32_1 = arith.constant 0 : i32
    return %c0_i32, %c0_i32_0 : i32, i32
  }
  func.func @transform_3(%arg0: i32) -> (i32, i32) {
    %c0_i32 = arith.constant 0 : i32
    %c0_i32_0 = arith.constant 0 : i32
    %c0_i32_1 = arith.constant 0 : i32
    return %c0_i32, %c0_i32_0 : i32, i32
  }
  func.func @transform_4(%arg0: i32) -> (i32, i32) {
    %c0_i32 = arith.constant 0 : i32
    %c0_i32_0 = arith.constant 0 : i32
    %c0_i32_1 = arith.constant 0 : i32
    return %c0_i32, %c0_i32_0 : i32, i32
  }
  func.func @transform_5(%arg0: i32) -> (i32, i32) {
    %c0_i32 = arith.constant 0 : i32
    %c0_i32_0 = arith.constant 0 : i32
    return %arg0, %c0_i32 : i32, i32
  }
}

</mosaic_0001>

<bundles_post_ra>
// kernel: tpu_custom_call.1
= control target key start
LH: loop header
LB: loop body
LE: loop exit
PB: predicated region body
PF: predicated region fallthrough
CT: control target
= control target key end

     0   :  { %v260_v0 = vmov 0.0   ;;  %vm261_vm0 = vmmov 0   ;;  %vm37_vm1 = vcmask 130048   ;;  %vm194_vm2 = vcmask 31744   ;;  %s331_s1 = inlined_call_operand.vmem [shape: bf16[16,128], index: 1, kind: input, shape index: {}]   ;;  %s332_s0 = inlined_call_operand.vmem [shape: bf16[8,16], index: 0, kind: input, shape index: {}]   ;;  %s333_s3 = inlined_call_operand.vmem [shape: bf16[128,4], index: 3, kind: input, shape index: {}]   ;;  %s334_s2 = inlined_call_operand.vmem [shape: f32[1,128], index: 2, kind: input, shape index: {}]   ;;  %s335_s4 = inlined_call_operand.vmem [shape: f32[1,4], index: 4, kind: input, shape index: {}]   ;;  %s336_s5 = inlined_call_operand.vmem [shape: f32[8,4], index: 5, kind: output, shape index: {}]  }
   0x1   :  { %223 = vmatprep.subr.bf16.mxu0 %v260_v0  ;;  %v251_v1 = vld [vmem:[%s331_s1] sm:$0xff]   ;;  %225 = vmatprep.mubr.msk.bf16.mxu0 %vm261_vm0, %v260_v0  ;;  %v252_v3 = vld [vmem:[%s333_s3 + $0x38] sm:$0xff]   ;;  %v253_v4 = vld [vmem:[%s333_s3 + $0x30] sm:$0xff]  }
   0x2   :  { %v21_v2 = vld [vmem:[%s332_s0] sm:$0xf]  ;;  %229 = vmatprep.subr.bf16.mxu1 %v260_v0  ;;  %245 = vmatprep.mubr.msk.bf16.mxu1 %vm261_vm0, %v260_v0  ;;  %v254_v5 = vld [vmem:[%s333_s3 + $0x28] sm:$0xff]   ;;  %v256_v7 = vld [vmem:[%s333_s3 + $0x18] sm:$0xff]  }
   0x3   :  { %224 = vmatpush3.bf16.msra.mxu0 %v251_v1  ;;  %230 = vmatpush3.bf16.msra.mxu1 %v252_v3  ;;  %v255_v6 = vld [vmem:[%s333_s3 + $0x20] sm:$0xff]   ;;  %v257_v8 = vld [vmem:[%s333_s3 + $0x10] sm:$0xff]   ;;  %v258_v9 = vld [vmem:[%s333_s3 + $0x8] sm:$0xff]  }
   0x4   :  { %231 = vmatprep.subr.bf16.mxu1 %v260_v0  ;;  %v259_v10 = vld [vmem:[%s333_s3] sm:$0xff]  }
   0x5   :  { %v200_v11 = vld [vmem:[%s334_s2] ss:$0 sm:$0xff] }
   0x6   :  { %226 = vmatmul.mubr.msk.bf16.vlgmr.msra.gmra.mxu0 %vm37_vm1, %v21_v2  ;;  %v203_v19 = vld [vmem:[%s335_s4] ss:$0 sm:$0xff] }
   0x7   :  { %232 = vmatpush3.bf16.msra.mxu1 %v253_v4 }
   0x8   :  { %233 = vmatprep.subr.bf16.mxu1 %v260_v0 }
   0xb   :  { %234 = vmatpush3.bf16.msra.mxu1 %v254_v5 }
   0xc   :  { %235 = vmatprep.subr.bf16.mxu1 %v260_v0 }
   0xf   :  { %236 = vmatpush3.bf16.msra.mxu1 %v255_v6 }
  0x10   :  { %237 = vmatprep.subr.bf16.mxu1 %v260_v0 }
  0x13   :  { %238 = vmatpush3.bf16.msra.mxu1 %v256_v7 }
  0x14   :  { %239 = vmatprep.subr.bf16.mxu1 %v260_v0 }
  0x17   :  { %240 = vmatpush3.bf16.msra.mxu1 %v257_v8 }
  0x18   :  { %241 = vmatprep.subr.bf16.mxu1 %v260_v0 }
  0x1b   :  { %242 = vmatpush3.bf16.msra.mxu1 %v258_v9 }
  0x1c   :  { %243 = vmatprep.subr.bf16.mxu1 %v260_v0 }
  0x1f   :  { %244 = vmatpush3.bf16.msra.mxu1 %v259_v10 }
  0xc6   :  { %v75_v12 = vpop.f32.mrf.mxu0 }
  0xc7   :  { %v76_v13 = vadd.f32 %v200_v11, %v75_v12 }
  0xc8   :  { %v227_v14 = vpop.f32.mrf.mxu0 }
  0xc9   :  { %v81_v15 = vmax.f32 %v76_v13, 0.0 }
  0xca   :  { %v78_v16 = vpop.f32.mrf.mxu0 }
  0xcb   :  { %v82_v17 = vpack.c.bf16 %v81_v15, %v81_v15 }
  0xcc   :  { %v228_v18 = vpop.f32.mrf.mxu0 }
  0xcd   :  { %246 = vmatmul.mubr.bf16.vlgmr.msra.gmra.mxu1 %v82_v17 }
 0x18d   :  { %v188_v20 = vpop.f32.mrf.mxu1 }
 0x18e   :  { %v189_v21 = vadd.f32 %v203_v19, %v188_v20 }
 0x18f   :  { %v247_v22 = vpop.f32.mrf.mxu1 }
 0x190   :  { %195 = vst.msk [vmem:[%s336_s5] sm:$0xff] %vm194_vm2, %v189_v21 }
 0x191   :  { %v191_v23 = vpop.f32.mrf.mxu1 }
 0x193   :  { %v248_v24 = vpop.f32.mrf.mxu1 }

</bundles_post_ra>
